<compile_context>
chip_gen: v6e
topology: v6e:2x2x1
jax: 0.10.0
libtpu: 0.0.40
codegen_flags: <defaults>
</compile_context>

<pallas_src>
import functools

import jax
import jax.numpy as jnp
from jax.experimental import pallas as pl
from jax.experimental.pallas import tpu as pltpu


def encoder_kernel(x_ref, w1_ref, b1_ref, w2_ref, b2_ref, noise_ref,
                   z_ref, kl_ref, *, latent_dim, latent_pad):
    # ---- Linear 1 (bf16 operands, f32 accumulate) + bias + ReLU -------------
    h = jnp.dot(x_ref[...], w1_ref[...], preferred_element_type=jnp.float32)
    h = jnp.maximum(h + b1_ref[...], 0.0)

    # ---- Linear 2: single matmul producing [mean | log_var] heads -----------
    # (split point latent_pad is a multiple of 128 -> lane-aligned static slice)
    y = jnp.dot(h.astype(jnp.bfloat16), w2_ref[...],
                preferred_element_type=jnp.float32) + b2_ref[...]
    mean = y[:, :latent_pad]
    log_var = y[:, latent_pad:]

    # ---- Reparameterization (f32 epilogue; exp goes to the EUP) -------------
    sigma = jnp.exp(log_var)
    z_ref[...] = (mean + sigma * noise_ref[...]).astype(z_ref.dtype)

    # ---- Per-row KL partial, masked to the real latent lanes ----------------
    lane = jax.lax.broadcasted_iota(jnp.int32, mean.shape, dimension=1)
    kl_terms = jnp.where(lane < latent_dim,
                         sigma * sigma + mean * mean - log_var - 0.5,
                         0.0)
    kl_ref[...] = jnp.sum(kl_terms, axis=-1, keepdims=True)


def encoder_forward(x, w1, b1, w2, b2, noise):
    """x: [B, input_dim]; returns (z: [B, latent_dim], kl: scalar)."""
    B, input_dim = x.shape
    hidden_dim = w1.shape[1]
    latent_dim = noise.shape[-1]

    # Lane-dense latent: pad to a multiple of 128.
    latent_pad = ((latent_dim + 127) // 128) * 128
    pad_l = latent_pad - latent_dim

    # Adaptive batch tile: wide MXU LHS, pipelined for large batches.
    tile_b = min(128, ((B + 7) // 8) * 8)
    b_pad_total = ((B + tile_b - 1) // tile_b) * tile_b
    pad_b = b_pad_total - B
    num_tiles = b_pad_total // tile_b

    # Re-pack the second projection as one [hidden, 2*latent_pad] matrix:
    # mean head in lanes [0, latent_pad), log_var head in [latent_pad, 2*lp).
    w2m = jnp.pad(w2[:, :latent_dim], ((0, 0), (0, pad_l)))
    w2v = jnp.pad(w2[:, latent_dim:], ((0, 0), (0, pad_l)))
    w2_comb = jnp.concatenate([w2m, w2v], axis=1).astype(jnp.bfloat16)
    b2m = jnp.pad(b2[:, :latent_dim], ((0, 0), (0, pad_l)))
    b2v = jnp.pad(b2[:, latent_dim:], ((0, 0), (0, pad_l)))
    b2_comb = jnp.concatenate([b2m, b2v], axis=1).astype(jnp.float32)

    x_p = jnp.pad(x, ((0, pad_b), (0, 0))).astype(jnp.bfloat16)
    noise_p = jnp.pad(noise, ((0, pad_b), (0, pad_l))).astype(jnp.float32)
    w1_b = w1.astype(jnp.bfloat16)
    b1_f = b1.astype(jnp.float32)

    kernel = functools.partial(encoder_kernel,
                               latent_dim=latent_dim, latent_pad=latent_pad)

    z_pad, kl_rows = pl.pallas_call(
        kernel,
        out_shape=(
            jax.ShapeDtypeStruct((b_pad_total, latent_pad), jnp.float32),
            jax.ShapeDtypeStruct((b_pad_total, 1), jnp.float32),
        ),
        grid=(num_tiles,),
        in_specs=[
            pl.BlockSpec((tile_b, input_dim), lambda i: (i, 0)),           # x
            pl.BlockSpec((input_dim, hidden_dim), lambda i: (0, 0)),       # w1 (resident)
            pl.BlockSpec((1, hidden_dim), lambda i: (0, 0)),               # b1 (resident)
            pl.BlockSpec((hidden_dim, 2 * latent_pad), lambda i: (0, 0)),  # w2 [mean|logvar]
            pl.BlockSpec((1, 2 * latent_pad), lambda i: (0, 0)),           # b2 [mean|logvar]
            pl.BlockSpec((tile_b, latent_pad), lambda i: (i, 0)),          # noise
        ],
        out_specs=(
            pl.BlockSpec((tile_b, latent_pad), lambda i: (i, 0)),          # z (lane-dense)
            pl.BlockSpec((tile_b, 1), lambda i: (i, 0)),                   # per-row KL
        ),
        compiler_params=pltpu.CompilerParams(
            dimension_semantics=("parallel",)),
    )(x_p, w1_b, b1_f, w2_comb, b2_comb, noise_p)

    z = z_pad[:B, :latent_dim]
    kl = jnp.sum(kl_rows[:B, 0])
    return z, kl


def init_params(key, input_dim, hidden_dim, latent_dim):
    """Deterministic init matching nn.Linear shapes (weights stored transposed)."""
    k1, k2, k3, k4 = jax.random.split(key, 4)
    s1 = 1.0 / jnp.sqrt(input_dim)
    s2 = 1.0 / jnp.sqrt(hidden_dim)
    w1 = jax.random.uniform(k1, (input_dim, hidden_dim), jnp.float32, -s1, s1)
    b1 = jax.random.uniform(k2, (1, hidden_dim), jnp.float32, -s1, s1)
    w2 = jax.random.uniform(k3, (hidden_dim, 2 * latent_dim), jnp.float32, -s2, s2)
    b2 = jax.random.uniform(k4, (1, 2 * latent_dim), jnp.float32, -s2, s2)
    return w1, b1, w2, b2


def reference_forward(x, w1, b1, w2, b2, noise):
    """Pure-JAX reference using the same bf16 MXU operands / f32 accumulation."""
    h = jnp.dot(x.astype(jnp.bfloat16), w1.astype(jnp.bfloat16),
                preferred_element_type=jnp.float32) + b1
    h = jnp.maximum(h, 0.0)
    y = jnp.dot(h.astype(jnp.bfloat16), w2.astype(jnp.bfloat16),
                preferred_element_type=jnp.float32) + b2
    latent = noise.shape[-1]
    mean, log_var = y[:, :latent], y[:, latent:]
    sigma = jnp.exp(log_var)
    z = mean + sigma * noise
    kl = jnp.sum(sigma ** 2 + mean ** 2 - log_var - 0.5)
    return z, kl


if __name__ == "__main__":
    input_dim, hidden_dim, latent_dim = 32, 64, 16
    batch = 16

    key = jax.random.PRNGKey(0)
    k_x, k_noise, k_params = jax.random.split(key, 3)

    x = jax.random.normal(k_x, (batch, input_dim), jnp.float32)
    noise = jax.random.normal(k_noise, (batch, latent_dim), jnp.float32)
    w1, b1, w2, b2 = init_params(k_params, input_dim, hidden_dim, latent_dim)

    fwd = jax.jit(encoder_forward)
    z, kl = fwd(x, w1, b1, w2, b2, noise)
    jax.block_until_ready((z, kl))

    # Sanity check against a pure-JAX reference with matching bf16 matmuls.
    z_ref, kl_ref = reference_forward(x, w1, b1, w2, b2, noise)
    assert z.shape == (batch, latent_dim)
    assert jnp.allclose(z, z_ref, atol=1e-3, rtol=1e-3), "z mismatch"
    assert jnp.allclose(kl, kl_ref, atol=5e-2, rtol=5e-3), "kl mismatch"

    print("KERNEL_OK")
</pallas_src>

<mosaic_0001>
module attributes {stable_mosaic.version = 11 : i64} {
  func.func @encoder_kernel(%arg0: i32, %arg1: memref<16x32xbf16, #tpu.memory_space<vmem>>, %arg2: memref<32x64xbf16, #tpu.memory_space<vmem>>, %arg3: memref<1x64xf32, #tpu.memory_space<vmem>>, %arg4: memref<64x256xbf16, #tpu.memory_space<vmem>>, %arg5: memref<1x256xf32, #tpu.memory_space<vmem>>, %arg6: memref<16x128xf32, #tpu.memory_space<vmem>>, %arg7: memref<16x128xf32, #tpu.memory_space<vmem>>, %arg8: memref<16x1xf32, #tpu.memory_space<vmem>>) attributes {dimension_semantics = [#tpu.dimension_semantics<parallel>], iteration_bounds = array<i64: 1>, scalar_prefetch = 0 : i64, scratch_operands = 0 : i64, tpu.core_type = #tpu.core_type<tc>, window_params = [{transform_indices = @transform_0, window_bounds = array<i64: 16, 32>}, {pipeline_mode = #tpu.pipeline_mode<synchronous>, transform_indices = @transform_1, window_bounds = array<i64: 32, 64>}, {pipeline_mode = #tpu.pipeline_mode<synchronous>, transform_indices = @transform_2, window_bounds = array<i64: 1, 64>}, {pipeline_mode = #tpu.pipeline_mode<synchronous>, transform_indices = @transform_3, window_bounds = array<i64: 64, 256>}, {pipeline_mode = #tpu.pipeline_mode<synchronous>, transform_indices = @transform_4, window_bounds = array<i64: 1, 256>}, {transform_indices = @transform_5, window_bounds = array<i64: 16, 128>}, {transform_indices = @transform_6, window_bounds = array<i64: 16, 128>}, {transform_indices = @transform_7, window_bounds = array<i64: 16, 1>}]} {
    %c0 = arith.constant 0 : index
    %c0_0 = arith.constant 0 : index
    %0 = vector.load %arg1[%c0, %c0_0] : memref<16x32xbf16, #tpu.memory_space<vmem>>, vector<16x32xbf16>
    %c0_1 = arith.constant 0 : index
    %c0_2 = arith.constant 0 : index
    %1 = vector.load %arg2[%c0_1, %c0_2] : memref<32x64xbf16, #tpu.memory_space<vmem>>, vector<32x64xbf16>
    %cst = arith.constant dense<0.000000e+00> : vector<16x64xf32>
    %2 = tpu.matmul %0, %1, %cst {dimension_numbers = #tpu.dot_dimension_numbers<[1], [0], [0], [1], [0, 0, 1, 1], [], []>} : vector<16x32xbf16>, vector<32x64xbf16>, vector<16x64xf32> -> vector<16x64xf32>
    %c0_3 = arith.constant 0 : index
    %c0_4 = arith.constant 0 : index
    %3 = vector.load %arg3[%c0_3, %c0_4] : memref<1x64xf32, #tpu.memory_space<vmem>>, vector<1x64xf32>
    %4 = vector.broadcast %3 : vector<1x64xf32> to vector<16x64xf32>
    %5 = arith.addf %2, %4 : vector<16x64xf32>
    %cst_5 = arith.constant 0.000000e+00 : f32
    %6 = vector.broadcast %cst_5 : f32 to vector<16x64xf32>
    %7 = arith.maximumf %5, %6 : vector<16x64xf32>
    %8 = arith.truncf %7 : vector<16x64xf32> to vector<16x64xbf16>
    %c0_6 = arith.constant 0 : index
    %c0_7 = arith.constant 0 : index
    %9 = vector.load %arg4[%c0_6, %c0_7] : memref<64x256xbf16, #tpu.memory_space<vmem>>, vector<64x256xbf16>
    %cst_8 = arith.constant dense<0.000000e+00> : vector<16x256xf32>
    %10 = tpu.matmul %8, %9, %cst_8 {dimension_numbers = #tpu.dot_dimension_numbers<[1], [0], [0], [1], [0, 0, 1, 1], [], []>} : vector<16x64xbf16>, vector<64x256xbf16>, vector<16x256xf32> -> vector<16x256xf32>
    %c0_9 = arith.constant 0 : index
    %c0_10 = arith.constant 0 : index
    %11 = vector.load %arg5[%c0_9, %c0_10] : memref<1x256xf32, #tpu.memory_space<vmem>>, vector<1x256xf32>
    %12 = vector.broadcast %11 : vector<1x256xf32> to vector<16x256xf32>
    %13 = arith.addf %10, %12 : vector<16x256xf32>
    %14 = vector.extract_strided_slice %13 {offsets = [0, 0], sizes = [16, 128], strides = [1, 1]} : vector<16x256xf32> to vector<16x128xf32>
    %15 = vector.extract_strided_slice %13 {offsets = [0, 128], sizes = [16, 128], strides = [1, 1]} : vector<16x256xf32> to vector<16x128xf32>
    %16 = math.exp %15 : vector<16x128xf32>
    %c0_11 = arith.constant 0 : index
    %c0_12 = arith.constant 0 : index
    %17 = vector.load %arg6[%c0_11, %c0_12] : memref<16x128xf32, #tpu.memory_space<vmem>>, vector<16x128xf32>
    %18 = arith.mulf %16, %17 : vector<16x128xf32>
    %19 = arith.addf %14, %18 : vector<16x128xf32>
    %c0_13 = arith.constant 0 : index
    %c0_14 = arith.constant 0 : index
    %20 = vector.load %arg7[%c0_13, %c0_14] : memref<16x128xf32, #tpu.memory_space<vmem>>, vector<16x128xf32>
    tpu.vector_store %arg7[%c0_13, %c0_14], %19 {strides = array<i32>} : memref<16x128xf32, #tpu.memory_space<vmem>>, vector<16x128xf32>,
    %21 = tpu.iota {dimensions = array<i32: 1>} : vector<16x128xi32>
    %c16_i32 = arith.constant 16 : i32
    %22 = vector.broadcast %c16_i32 : i32 to vector<16x128xi32>
    %23 = arith.cmpi slt, %21, %22 : vector<16x128xi32>
    %24 = arith.mulf %16, %16 : vector<16x128xf32>
    %25 = arith.mulf %14, %14 : vector<16x128xf32>
    %26 = arith.addf %24, %25 : vector<16x128xf32>
    %27 = arith.subf %26, %15 : vector<16x128xf32>
    %cst_15 = arith.constant 5.000000e-01 : f32
    %28 = vector.broadcast %cst_15 : f32 to vector<16x128xf32>
    %29 = arith.subf %27, %28 : vector<16x128xf32>
    %cst_16 = arith.constant 0.000000e+00 : f32
    %30 = vector.broadcast %cst_16 : f32 to vector<16x128xf32>
    %31 = arith.select %23, %29, %30 : vector<16x128xi1>, vector<16x128xf32>
    %cst_17 = arith.constant dense<0.000000e+00> : vector<16xf32>
    %32 = vector.multi_reduction <add>, %31, %cst_17 [1] : vector<16x128xf32> to vector<16xf32>
    %33 = vector.shape_cast %32 : vector<16xf32> to vector<16x1xf32>
    %c0_18 = arith.constant 0 : index
    %c0_19 = arith.constant 0 : index
    %34 = vector.load %arg8[%c0_18, %c0_19] : memref<16x1xf32, #tpu.memory_space<vmem>>, vector<16x1xf32>
    tpu.vector_store %arg8[%c0_18, %c0_19], %33 {strides = array<i32>} : memref<16x1xf32, #tpu.memory_space<vmem>>, vector<16x1xf32>,
    return
  }
  func.func @transform_0(%arg0: i32) -> (i32, i32) {
    %c0_i32 = arith.constant 0 : i32
    %c0_i32_0 = arith.constant 0 : i32
    return %arg0, %c0_i32 : i32, i32
  }
  func.func @transform_1(%arg0: i32) -> (i32, i32) {
    %c0_i32 = arith.constant 0 : i32
    %c0_i32_0 = arith.constant 0 : i32
    %c0_i32_1 = arith.constant 0 : i32
    return %c0_i32, %c0_i32_0 : i32, i32
  }
  func.func @transform_2(%arg0: i32) -> (i32, i32) {
    %c0_i32 = arith.constant 0 : i32
    %c0_i32_0 = arith.constant 0 : i32
    %c0_i32_1 = arith.constant 0 : i32
    return %c0_i32, %c0_i32_0 : i32, i32
  }
  func.func @transform_3(%arg0: i32) -> (i32, i32) {
    %c0_i32 = arith.constant 0 : i32
    %c0_i32_0 = arith.constant 0 : i32
    %c0_i32_1 = arith.constant 0 : i32
    return %c0_i32, %c0_i32_0 : i32, i32
  }
  func.func @transform_4(%arg0: i32) -> (i32, i32) {
    %c0_i32 = arith.constant 0 : i32
    %c0_i32_0 = arith.constant 0 : i32
    %c0_i32_1 = arith.constant 0 : i32
    return %c0_i32, %c0_i32_0 : i32, i32
  }
  func.func @transform_5(%arg0: i32) -> (i32, i32) {
    %c0_i32 = arith.constant 0 : i32
    %c0_i32_0 = arith.constant 0 : i32
    return %arg0, %c0_i32 : i32, i32
  }
  func.func @transform_6(%arg0: i32) -> (i32, i32) {
    %c0_i32 = arith.constant 0 : i32
    %c0_i32_0 = arith.constant 0 : i32
    return %arg0, %c0_i32 : i32, i32
  }
  func.func @transform_7(%arg0: i32) -> (i32, i32) {
    %c0_i32 = arith.constant 0 : i32
    %c0_i32_0 = arith.constant 0 : i32
    return %arg0, %c0_i32 : i32, i32
  }
}

</mosaic_0001>

<bundles_post_ra>
// kernel: encoder_forward.1
= control target key start
LH: loop header
LB: loop body
LE: loop exit
PB: predicated region body
PF: predicated region fallthrough
CT: control target
= control target key end

     0   :  { %v340_v1 = vmov 0.0   ;;  %vm341_vm0 = vmmov 0   ;;  %vm57_vm1 = vcmask 261120   ;;  %s440_s0 = inlined_call_operand.vmem [shape: bf16[16,32], index: 0, kind: input, shape index: {}]   ;;  %s441_s1 = inlined_call_operand.vmem [shape: bf16[32,64], index: 1, kind: input, shape index: {}]   ;;  %s442_s2 = inlined_call_operand.vmem [shape: f32[1,64], index: 2, kind: input, shape index: {}]   ;;  %s443_s3 = inlined_call_operand.vmem [shape: bf16[64,256], index: 3, kind: input, shape index: {}]   ;;  %s444_s4 = inlined_call_operand.vmem [shape: f32[1,256], index: 4, kind: input, shape index: {}]   ;;  %s445_s5 = inlined_call_operand.vmem [shape: f32[16,128], index: 5, kind: input, shape index: {}]   ;;  %s446_s6 = inlined_call_operand.hbm [shape: f32[16,128], index: 6, kind: output, shape index: {0}]   ;;  %s447_s7 = inlined_call_operand.vmem [shape: f32[16,1], index: 7, kind: output, shape index: {1}]  }
   0x1   :  { %v299_v0 = vld [vmem:[%s441_s1 + $0x8] sm:$0xff]   ;;  %285 = vmatprep.subr.bf16.mxu0 %v340_v1  ;;  %v300_v2 = vld [vmem:[%s441_s1] sm:$0xff]   ;;  %289 = vmatprep.mubr.msk.bf16.mxu0 %vm341_vm0, %v340_v1  ;;  %v302_v3 = vld [vmem:[%s443_s3 + $0x34] ss:$8 sps:$4 sm:$0xff]  }
   0x2   :  { %286 = vmatpush3.bf16.msra.mxu0 %v299_v0  ;;  %v304_v4 = vld [vmem:[%s443_s3 + $0x30] ss:$8 sps:$4 sm:$0xff]   ;;  %v301_v5 = vld [vmem:[%s440_s0] sm:$0xff]   ;;  %177 = vmatprep.subr.bf16.mxu1 %v302_v3 }
   0x3   :  { %287 = vmatprep.subr.bf16.mxu0 %v340_v1  ;;  %v305_v6 = vld [vmem:[%s443_s3 + $0x24] ss:$8 sps:$4 sm:$0xff]   ;;  %178 = vmatpush1.bf16.msra.mxu1 %v304_v4 }
   0x4   :  { %179 = vmatprep.subr.bf16.mxu1 %v305_v6 }
   0x6   :  { %288 = vmatpush3.bf16.msra.mxu0 %v300_v2 }
   0x7   :  { %13 = vsyncpa [#allocation3], 0  ;;  %v307_v7 = vld [vmem:[%s443_s3 + $0x20] ss:$8 sps:$4 sm:$0xff]   ;;  %v308_v8 = vld [vmem:[%s443_s3 + $0x14] ss:$8 sps:$4 sm:$0xff]   ;;  %v115_v23 = vlaneseq }
   0x8   :  { %180 = vmatpush1.bf16.msra.mxu1 %v307_v7  ;;  %v310_v9 = vld [vmem:[%s443_s3 + $0x10] ss:$8 sps:$4 sm:$0xff]   ;;  %v311_v10 = vld [vmem:[%s443_s3 + $0x4] ss:$8 sps:$4 sm:$0xff]   ;;  %v313_v11 = vld [vmem:[%s443_s3] ss:$8 sps:$4 sm:$0xff]  }
   0x9   :  { %290 = vmatmul.mubr.msk.bf16.vlgmr.msra.gmra.mxu0 %vm57_vm1, %v301_v5  ;;  %181 = vmatprep.subr.bf16.mxu1 %v308_v8  ;;  %v342_v12 = vmov 0   ;;  %v266_v13 = vld [vmem:[%s442_s2] ss:$0 sm:$0xff]  ;;  %vm165_vm2 = vcmask 523264   ;;  %v116_v24 = vshrl.u32 %v115_v23, 7  ;;  %v225_v45 = vand.u32 127, %v115_v23 }
   0xa   :  { %201 = vmatprep.mubr.bf16.mxu1 %v342_v12  ;;  %v113_v26 = vld [vmem:[%s444_s4] sm:$0x3]  ;;  %v217_v46 = vld [vmem:[%s445_s5 + $0x8] sm:$0xff] }
   0xb   :  { %v121_v25 = vsub.s32 1, %v116_v24  ;;  %v117_v35 = vsub.s32 0, %v116_v24  ;;  %v216_v39 = vld [vmem:[%s445_s5] sm:$0xff]  ;;  %vm226_vm3 = vcmp.lt.s32.totalorder %v225_v45, 16  ;;  %s343_s5 = smov [#allocation2]  }
   0xc   :  { %182 = vmatpush1.bf16.msra.mxu1 %v310_v9  ;;  %s251_s26 = sshll.u32 %s343_s5, 4  ;;  %s252_s26 = int_to_ptr.vmem [resolvable:$true] %s251_s26 }
   0xd   :  { %183 = vmatprep.subr.bf16.mxu1 %v311_v10  ;;  %v122_v27 = vrot.slane %v113_v26, %v121_v25  ;;  %v118_v37 = vrot.slane %v113_v26, %v117_v35  ;;  %s318_s27 = scalar_lea.vmem %s252_s26, 256  ;;  %p323_p1 = scmp.lt.s32.totalorder %s252_s26, %s252_s26 }
   0xe   :  { %p319_p0 = scmp.ne.s32.totalorder %s252_s26, %s318_s27  ;;  %p324_p2 = scmp.lt.s32.totalorder %s318_s27, %s318_s27 }
  0x10   :  { %184 = vmatpush1.bf16.msra.mxu1 %v313_v11  ;;  %p325_p3 = por %p324_p2, %p323_p1 }
  0x12   :  { %p326_p4 = pnand %p325_p3, %p319_p0 }
  0xc9   :  { %v95_v14 = vpop.f32.mrf.mxu0 }
  0xca   :  { %v96_v16 = vadd.f32 %v266_v13, %v95_v14 }
  0xcb   :  { %v291_v15 = vpop.f32.mrf.mxu0 }
  0xcc   :  { %v102_v20 = vmax.f32 %v96_v16, 0.0 }
  0xcd   :  { %v98_v17 = vpop.f32.mrf.mxu0 }
  0xce   :  { %v99_v18 = vadd.f32 %v266_v13, %v98_v17 }
  0xcf   :  { %v292_v19 = vpop.f32.mrf.mxu0 }
  0xd0   :  { %v103_v21 = vmax.f32 %v99_v18, 0.0 }
  0xd2   :  { %v104_v22 = vpack.c.bf16 %v103_v21, %v102_v20 }
  0xd4   :  { %279 = vmatmul.mubr.msk.bf16.vlgmr.msra.gmra.mxu1 %vm165_vm2, %v104_v22 }
 0x194   :  { %v203_v28 = vpop.f32.mrf.mxu1 }
 0x195   :  { %v204_v38 = vadd.f32 %v203_v28, %v118_v37 }
 0x196   :  { %v205_v29 = vpop.f32.mrf.mxu1 }
 0x197   :  { %v206_v30 = vadd.f32 %v205_v29, %v122_v27  ;;  %v229_v41 = vmul.f32 %v204_v38, %v204_v38 }
 0x198   :  { %v207_v31 = vpop.f32.mrf.mxu1 }
 0x199   :  { %v212_v32 = vmul.f32 1.442695, %v206_v30  ;;  %v208_v42 = vadd.f32 %v207_v31, %v118_v37 }
 0x19a   :  { %v209_v33 = vpop.f32.mrf.mxu1 }
 0x19b   :  { %314 = vpow2.f32 %v212_v32  ;;  %v210_v34 = vadd.f32 %v209_v33, %v122_v27  ;;  %v230_v50 = vmul.f32 %v208_v42, %v208_v42 }
 0x19d   :  { %v214_v36 = vmul.f32 1.442695, %v210_v34 }
 0x19f   :  { %316 = vpow2.f32 %v214_v36 }
 0x1a8   :  { %v315_v40 = vpop.eup %314 }
 0x1a9   :  { %v227_v43 = vmul.f32 %v315_v40, %v315_v40  ;;  %v218_v44 = vmul.f32 %v315_v40, %v216_v39 }
 0x1ab   :  { %v231_v47 = vadd.f32 %v229_v41, %v227_v43  ;;  %v220_v48 = vadd.f32 %v218_v44, %v204_v38 }
 0x1ac   :  { %v317_v49 = vpop.eup %316 }
 0x1ad   :  { %v228_v51 = vmul.f32 %v317_v49, %v317_v49  ;;  %v233_v52 = vsub.f32 %v231_v47, %v206_v30  ;;  %v219_v53 = vmul.f32 %v317_v49, %v217_v46  ;;  %222 = vst [vmem:[#allocation2] sm:$0xff] %v220_v48 }
 0x1af   :  { %v232_v54 = vadd.f32 %v230_v50, %v228_v51  ;;  %v280_v55 = vadd.f32 -0.5, %v233_v52  ;;  %v221_v56 = vadd.f32 %v219_v53, %v208_v42 }
 0x1b1   :  { %v234_v57 = vsub.f32 %v232_v54, %v210_v34  ;;  %v237_v58 = vsel %vm226_vm3, %v280_v55, 0.0  ;;  %223 = vst [vmem:[#allocation2 + $0x8] sm:$0xff] %v221_v56 }
 0x1b2   :  { %239 = vadd.xlane.f32.xlu0 %v237_v58 }
 0x1b3   :  { %v281_v59 = vadd.f32 -0.5, %v234_v57 }
 0x1b5   :  { %v238_v60 = vsel %vm226_vm3, %v281_v59, 0.0 }
 0x1b6   :  { %241 = vadd.xlane.f32.xlu0 %v238_v60 }
 0x1b7   :  { %329 = shalt.err (!%p326_p4)
}
 0x1b8   :  { %s344_s28 = smov 128   ;;  %s345_s29 = smov 8   ;;  %vm243_vm4 = vcmask 7168  }
 0x1b9   :  { %257 = dma.vmem_to_hbm [thread:$0]  %s252_s26, 256, %s446_s6, [#allocation3], %s344_s28, %s344_s28, %s345_s29  }
 0x23b   :  { %v240_v61 = vpop.xlane.xlu0 %239 }
 0x23c   :  { %244 = vst.msk [vmem:[%s447_s7] sm:$0xff] %vm243_vm4, %v240_v61 }
 0x23f   :  { %v242_v62 = vpop.xlane.xlu0 %241 }
 0x240   :  { %245 = vst.msk [vmem:[%s447_s7 + $0x8] sm:$0xff] %vm243_vm4, %v242_v62 }
 0x241   :  { %338 = dma.done.wait [#allocation3], 256  }
 0x242   :  { %339 = vsyncadd [#allocation3], 4294967040 }
 0x243   :  { %265 = vsyncpa [#allocation3], 1 }

</bundles_post_ra>
